<compile_context>
chip_gen: v7x
topology: tpu7x:2x2x1
jax: 0.10.0
libtpu: 0.0.40
codegen_flags: <defaults>
</compile_context>

<pallas_src>
import functools

import jax
import jax.numpy as jnp
from jax import lax
from jax.experimental import pallas as pl
from jax.experimental.pallas import tpu as pltpu

OUT_CHANNELS = 16
BRANCH_CFG = ((2, 1), (4, 2), (8, 4))  # (kernel_size, padding); stride=2 for all
STRIDE = 2


def _inception_fused_kernel(z_ref, w_ref, b_ref, o_ref):
    """z_ref: (T_L+3, 2*C_in) pair-folded input window (3-row halo)
       w_ref: (48, 8*C_in)    fused zero-padded weight (all 3 branches)
       b_ref: (48, 1)         fused bias (f32)
       o_ref: (48, T_L)       output tile, NCL layout."""
    t_l = o_ref.shape[-1]
    z = z_ref[...]
    # In-kernel im2col: output row o uses Z rows o..o+3 -> taps t = 2*s + p.
    # Column order: col = s*(2*C_in) + 2*c + p (weight was permuted to match).
    patch = jnp.concatenate([z[s:s + t_l, :] for s in range(4)], axis=-1)  # (T_L, 8C)
    # Single fused MXU matmul producing the NCL tile directly:
    # (48, 8C) . (T_L, 8C)^T -> (48, T_L), f32 accumulation.
    y = lax.dot_general(
        w_ref[...], patch,
        dimension_numbers=(((1,), (1,)), ((), ())),
        preferred_element_type=jnp.float32)
    y = jnp.maximum(y + b_ref[...], 0.0)            # bias + ReLU in f32
    o_ref[...] = y.astype(o_ref.dtype)              # one contiguous store


@functools.partial(jax.jit, static_argnames=("compute_dtype", "l_tile"))
def inception_block_1d(x, weights, biases, *, compute_dtype=jnp.float32,
                       l_tile=512):
    """x: (N, C_in, L) f32.  weights: [(OC,C_in,2), (OC,C_in,4), (OC,C_in,8)].
    biases: [(OC,)]*3.  Returns (N, 3*OC, L_out) f32, matching PyTorch."""
    n, c_in, l = x.shape
    oc = weights[0].shape[0]
    oc3 = 3 * oc
    l_out = l // 2 + 1  # identical for all three branches (2*pad == k)

    # ---- fused zero-padded 8-tap weight, torch.cat order [b1, b2, b3] ----
    w1, w2, w3 = weights
    wf = jnp.zeros((oc3, c_in, 8), jnp.float32)
    wf = wf.at[0 * oc:1 * oc, :, 3:5].set(w1.astype(jnp.float32))
    wf = wf.at[1 * oc:2 * oc, :, 2:6].set(w2.astype(jnp.float32))
    wf = wf.at[2 * oc:3 * oc, :, 0:8].set(w3.astype(jnp.float32))
    # Permute taps to the in-kernel patch column order col = s*(2C) + 2c + p
    # with tap t = 2s + p; keep the 48-channel dim as the matmul M dim.
    w_t = wf.reshape(oc3, c_in, 4, 2).transpose(0, 2, 1, 3).reshape(oc3, 8 * c_in)
    bias = jnp.concatenate(biases).astype(jnp.float32).reshape(oc3, 1)

    # Cast once up-front: halves every HBM pass (pad/fold/window DMA) on bf16.
    x = x.astype(compute_dtype)
    w_t = w_t.astype(compute_dtype)

    # ---- pair-fold padded input: Z[n, h, 2c+p] = x_pad[n, c, 2h+p] ----
    pad_r = 4 + (l % 2)                   # keep padded length even
    x_pad = jnp.pad(x, ((0, 0), (0, 0), (4, pad_r)))
    h = x_pad.shape[-1] // 2
    z = x_pad.reshape(n, c_in, h, 2).transpose(0, 2, 1, 3).reshape(n, h, 2 * c_in)

    # ---- L_out tiling (the matmul's wide / lane dim) ----
    if l_out <= l_tile:
        t_l = l_out                       # full extent -> allowed block shape
        num_j = 1
    else:
        assert l_tile % 128 == 0          # lane-dense output stores
        t_l = l_tile
        num_j = pl.cdiv(l_out, t_l)

    # Non-overlapping per-tile windows with a 3-row halo so plain Blocked
    # BlockSpecs suffice (no overlapping blocks / manual DMA).  Built with a
    # constant number of XLA ops regardless of num_j.
    if num_j == 1:
        h_need = t_l + 3
        if h_need > h:
            z = jnp.pad(z, ((0, 0), (0, h_need - h), (0, 0)))
        z_win = z[:, None, :h_need, :]                       # (n, 1, T_L+3, 2C)
    else:
        h_need = (num_j + 1) * t_l        # one extra block feeds every halo
        if h_need > h:
            z = jnp.pad(z, ((0, 0), (0, h_need - h), (0, 0)))
        else:
            z = z[:, :h_need, :]
        zb = z.reshape(n, num_j + 1, t_l, 2 * c_in)
        z_win = jnp.concatenate([zb[:, :num_j], zb[:, 1:, :3, :]], axis=2)

    cost = pl.CostEstimate(
        flops=2 * n * l_out * oc3 * 8 * c_in,
        transcendentals=0,
        bytes_accessed=(z_win.size * z_win.dtype.itemsize
                        + w_t.size * w_t.dtype.itemsize
                        + bias.size * 4
                        + n * oc3 * l_out * 4))

    out = pl.pallas_call(
        _inception_fused_kernel,
        out_shape=jax.ShapeDtypeStruct((n, oc3, l_out), jnp.float32),
        grid_spec=pltpu.PrefetchScalarGridSpec(
            num_scalar_prefetch=0,
            grid=(n, num_j),
            in_specs=[
                pl.BlockSpec(
                    (pl.Squeezed(), pl.Squeezed(), t_l + 3, 2 * c_in),
                    lambda i, j: (i, j, 0, 0)),
                pl.BlockSpec((oc3, 8 * c_in), lambda i, j: (0, 0)),  # resident
                pl.BlockSpec((oc3, 1), lambda i, j: (0, 0)),         # resident
            ],
            out_specs=pl.BlockSpec(
                (pl.Squeezed(), oc3, t_l), lambda i, j: (i, 0, j)),
        ),
        compiler_params=pltpu.CompilerParams(
            dimension_semantics=("parallel", "parallel")),
        cost_estimate=cost,
    )(z_win, w_t, bias)
    return out


def _reference(x, weights, biases):
    """Pure-JAX reference via lax.conv_general_dilated (== PyTorch Conv1d)."""
    outs = []
    for (k, pad), w, b in zip(BRANCH_CFG, weights, biases):
        y = lax.conv_general_dilated(
            x, w, window_strides=(STRIDE,), padding=[(pad, pad)],
            dimension_numbers=("NCH", "OIH", "NCH"))
        y = jnp.maximum(y + b[None, :, None], 0.0)
        outs.append(y)
    return jnp.concatenate(outs, axis=1)


if __name__ == "__main__":
    # Small shapes consistent with the module: batch=2, in_channels=4, length=16.
    N, C_IN, L = 2, 4, 16
    key = jax.random.PRNGKey(0)
    kx, *kws = jax.random.split(key, 1 + 2 * len(BRANCH_CFG))

    x = jax.random.normal(kx, (N, C_IN, L), dtype=jnp.float32)

    weights, biases = [], []
    for i, (k, _pad) in enumerate(BRANCH_CFG):
        fan_in = C_IN * k
        scale = 1.0 / jnp.sqrt(fan_in)
        w = scale * jax.random.normal(kws[2 * i], (OUT_CHANNELS, C_IN, k),
                                      dtype=jnp.float32)
        b = scale * jax.random.normal(kws[2 * i + 1], (OUT_CHANNELS,),
                                      dtype=jnp.float32)
        weights.append(w)
        biases.append(b)

    ref = _reference(x, weights, biases)

    # Exact path (f32 MXU inputs).
    out_f32 = jax.block_until_ready(
        inception_block_1d(x, weights, biases, compute_dtype=jnp.float32))
    assert out_f32.shape == ref.shape == (N, 3 * OUT_CHANNELS, L // 2 + 1)
    assert jnp.allclose(out_f32, ref, atol=1e-5, rtol=1e-5)

    # Fast path for v6e/v7x (bf16 MXU inputs, f32 accumulation).
    out_bf16 = jax.block_until_ready(
        inception_block_1d(x, weights, biases, compute_dtype=jnp.bfloat16))
    assert jnp.allclose(out_bf16, ref, atol=5e-2, rtol=5e-2)

    # Longer sequence to exercise the multi-tile path (2 L_out tiles, partial
    # last block, 3-row halo windows).
    L2 = 300
    x2 = jax.random.normal(jax.random.PRNGKey(1), (N, C_IN, L2),
                           dtype=jnp.float32)
    ref2 = _reference(x2, weights, biases)
    out2 = jax.block_until_ready(
        inception_block_1d(x2, weights, biases, compute_dtype=jnp.float32,
                           l_tile=128))
    assert out2.shape == ref2.shape == (N, 3 * OUT_CHANNELS, L2 // 2 + 1)
    assert jnp.allclose(out2, ref2, atol=1e-5, rtol=1e-5)

    print("KERNEL_OK")
</pallas_src>

<mosaic_0001>
module attributes {stable_mosaic.version = 11 : i64} {
  func.func @_inception_fused_kernel(%arg0: i32, %arg1: i32, %arg2: memref<1x1x12x8xf32, #tpu.memory_space<vmem>>, %arg3: memref<48x32xf32, #tpu.memory_space<vmem>>, %arg4: memref<48x1xf32, #tpu.memory_space<vmem>>, %arg5: memref<1x48x9xf32, #tpu.memory_space<vmem>>) attributes {dimension_semantics = [#tpu.dimension_semantics<parallel>, #tpu.dimension_semantics<parallel>], iteration_bounds = array<i64: 2, 1>, scalar_prefetch = 0 : i64, scratch_operands = 0 : i64, tpu.core_type = #tpu.core_type<tc>, window_params = [{transform_indices = @transform_0, window_bounds = array<i64: 1, 1, 12, 8>}, {pipeline_mode = #tpu.pipeline_mode<synchronous>, transform_indices = @transform_1, window_bounds = array<i64: 48, 32>}, {pipeline_mode = #tpu.pipeline_mode<synchronous>, transform_indices = @transform_2, window_bounds = array<i64: 48, 1>}, {transform_indices = @transform_3, window_bounds = array<i64: 1, 48, 9>}]} {
    %c0 = arith.constant 0 : index
    %c0_0 = arith.constant 0 : index
    %c0_1 = arith.constant 0 : index
    %c0_2 = arith.constant 0 : index
    %0 = vector.load %arg2[%c0, %c0_0, %c0_1, %c0_2] : memref<1x1x12x8xf32, #tpu.memory_space<vmem>>, vector<1x1x12x8xf32>
    %1 = vector.shape_cast %0 : vector<1x1x12x8xf32> to vector<12x8xf32>
    %2 = vector.extract_strided_slice %1 {offsets = [0, 0], sizes = [9, 8], strides = [1, 1]} : vector<12x8xf32> to vector<9x8xf32>
    %3 = vector.extract_strided_slice %1 {offsets = [1, 0], sizes = [9, 8], strides = [1, 1]} : vector<12x8xf32> to vector<9x8xf32>
    %4 = vector.extract_strided_slice %1 {offsets = [2, 0], sizes = [9, 8], strides = [1, 1]} : vector<12x8xf32> to vector<9x8xf32>
    %5 = vector.extract_strided_slice %1 {offsets = [3, 0], sizes = [9, 8], strides = [1, 1]} : vector<12x8xf32> to vector<9x8xf32>
    %6 = tpu.concatenate %2, %3, %4, %5 in 1 : vector<9x8xf32>, vector<9x8xf32>, vector<9x8xf32>, vector<9x8xf32> -> vector<9x32xf32>
    %c0_3 = arith.constant 0 : index
    %c0_4 = arith.constant 0 : index
    %7 = vector.load %arg3[%c0_3, %c0_4] : memref<48x32xf32, #tpu.memory_space<vmem>>, vector<48x32xf32>
    %cst = arith.constant dense<0.000000e+00> : vector<48x9xf32>
    %8 = tpu.matmul %7, %6, %cst {dimension_numbers = #tpu.dot_dimension_numbers<[1], [1], [0], [0], [0, 0, 1, 0], [], []>} : vector<48x32xf32>, vector<9x32xf32>, vector<48x9xf32> -> vector<48x9xf32>
    %c0_5 = arith.constant 0 : index
    %c0_6 = arith.constant 0 : index
    %9 = vector.load %arg4[%c0_5, %c0_6] : memref<48x1xf32, #tpu.memory_space<vmem>>, vector<48x1xf32>
    %10 = vector.broadcast %9 : vector<48x1xf32> to vector<48x9xf32>
    %11 = arith.addf %8, %10 : vector<48x9xf32>
    %cst_7 = arith.constant 0.000000e+00 : f32
    %12 = vector.broadcast %cst_7 : f32 to vector<48x9xf32>
    %13 = arith.maximumf %11, %12 : vector<48x9xf32>
    %c0_8 = arith.constant 0 : index
    %c0_9 = arith.constant 0 : index
    %c0_10 = arith.constant 0 : index
    %14 = vector.load %arg5[%c0_8, %c0_9, %c0_10] : memref<1x48x9xf32, #tpu.memory_space<vmem>>, vector<1x48x9xf32>
    %15 = vector.shape_cast %14 : vector<1x48x9xf32> to vector<48x9xf32>
    %16 = vector.shape_cast %13 : vector<48x9xf32> to vector<1x48x9xf32>
    tpu.vector_store %arg5[%c0_8, %c0_9, %c0_10], %16 {strides = array<i32>} : memref<1x48x9xf32, #tpu.memory_space<vmem>>, vector<1x48x9xf32>,
    return
  }
  func.func @transform_0(%arg0: i32, %arg1: i32) -> (i32, i32, i32, i32) {
    %c0_i32 = arith.constant 0 : i32
    %c0_i32_0 = arith.constant 0 : i32
    %c0_i32_1 = arith.constant 0 : i32
    return %arg0, %arg1, %c0_i32, %c0_i32_0 : i32, i32, i32, i32
  }
  func.func @transform_1(%arg0: i32, %arg1: i32) -> (i32, i32) {
    %c0_i32 = arith.constant 0 : i32
    %c0_i32_0 = arith.constant 0 : i32
    %c0_i32_1 = arith.constant 0 : i32
    return %c0_i32, %c0_i32_0 : i32, i32
  }
  func.func @transform_2(%arg0: i32, %arg1: i32) -> (i32, i32) {
    %c0_i32 = arith.constant 0 : i32
    %c0_i32_0 = arith.constant 0 : i32
    %c0_i32_1 = arith.constant 0 : i32
    return %c0_i32, %c0_i32_0 : i32, i32
  }
  func.func @transform_3(%arg0: i32, %arg1: i32) -> (i32, i32, i32) {
    %c0_i32 = arith.constant 0 : i32
    %c0_i32_0 = arith.constant 0 : i32
    return %arg0, %c0_i32, %arg1 : i32, i32, i32
  }
}

</mosaic_0001>

<bundles_post_ra>
// kernel: inception_block_1d.1
= control target key start
LH: loop header
LB: loop body
LE: loop exit
PB: predicated region body
PF: predicated region fallthrough
CT: control target
= control target key end

     0   :  { %s651_s12 = smov 0   ;;  %s653_s13 = smov 0   ;;  %s738_s0 = inlined_call_operand.vmem [shape: f32[2,1,12,8], index: 0, kind: input, shape index: {}]   ;;  %s739_s1 = inlined_call_operand.vmem [shape: f32[48,32], index: 1, kind: input, shape index: {}]   ;;  %s740_s2 = inlined_call_operand.vmem [shape: f32[48,1], index: 2, kind: input, shape index: {}]   ;;  %s741_s3 = inlined_call_operand.vmem [shape: f32[2,48,9], index: 3, kind: output, shape index: {}]  }
   0x1   :  { %s655_s14 = smov 0  }
   0x2 LB: > { %s25_s15 = sadd.s32 1, %s621_s13  ;;  %p513_p0 = scmp.ge.s32.totalorder %s625_s14, 1  ;;  %s625_s14 = sphi %s655_s14, %s13_s14   ;;  %s621_s13 = sphi %s653_s13, %s743_s13   ;;  %s617_s12 = sphi %s651_s12, %s742_s12  }
   0x3   : > { %p27_p1 = scmp.ge.s32.totalorder %s25_s15, 2  ;;  %p157_p2 = scmp.lt.s32.totalorder %s625_s14, 3 }
   0x5   : > { %s745_s15 = smov (%p27_p1, %s25_s15), 0  ;;  %p158_p3 = pnand %p513_p0, %p157_p2 }
   0x6   : > { %p188_p4 = scmp.lt.s32.totalorder (!%p158_p3), %s617_s12, 1  ;;  %vm209_vm0 = vcmask (!%p158_p3), 1046528   ;;  %vm219_vm1 = vcmask (!%p158_p3), 1045504   ;;  %vm229_vm2 = vcmask (!%p158_p3), 1044480   ;;  %vm290_vm3 = vcmask (!%p158_p3), 261120   ;;  %v248_v12 = vld [vmem:[%s739_s1] sm:$0xff] (!%p158_p3) }
   0x7   : > { %161 = sbr.rel (%p158_p3) target bundleno = 378 (0x17a), region = 32  ;;  %v250_v13 = vld [vmem:[%s739_s1 + $0x10] sm:$0xff] (!%p158_p3)  ;;  %540 = vmatprep.mubr.msk.f32.mxu0 (!%p158_p3), %vm290_vm3, %v248_v12  ;;  %s627_s24 = smov (!%p158_p3), 8   ;;  %v254_v16 = vld [vmem:[%s740_s2] sm:$0xff] (!%p158_p3)  ;;  %v630_v17 = vmov (!%p158_p3), 0   ;;  %v255_v18 = vld [vmem:[%s740_s2 + $0x8] sm:$0xff] (!%p158_p3) }
   0x8   : > { %543 = vmatprep.mubr.msk.f32.mxu1 (!%p158_p3), %vm290_vm3, %v250_v13  ;;  %s628_s25 = smov (!%p158_p3), 24   ;;  %s629_s26 = smov (!%p158_p3), 16   ;;  %601 = vset.pattern.permute.xlu1 (!%p158_p3), %v630_v17  ;;  %v256_v19 = vld [vmem:[%s740_s2 + $0x10] sm:$0xff] (!%p158_p3)  ;;  %v258_v20 = vld [vmem:[%s740_s2 + $0x20] sm:$0xff] (!%p158_p3)  ;;  %v257_v21 = vld [vmem:[%s740_s2 + $0x18] sm:$0xff] (!%p158_p3)  ;;  %vm239_vm4 = vcmask (!%p158_p3), 64512  }
   0x9   : > { %602 = vset.pattern.permute.xlu0 (!%p158_p3), %v630_v17  ;;  %v259_v22 = vld [vmem:[%s740_s2 + $0x28] sm:$0xff] (!%p158_p3)  ;;  %vm242_vm5 = vcmask (!%p158_p3), 130048   ;;  %vm245_vm6 = vcmask (!%p158_p3), 195584   ;;  %vm550_vm7 = vmpackc.low (!%p158_p3), %vm290_vm3, %vm290_vm3  ;;  %v251_v40 = vld [vmem:[%s739_s1 + $0x18] sm:$0xff] (!%p158_p3)  ;;  %vm416_vm8 = vcmask (!%p158_p3), 72704  }
   0xa   : > { %v249_v39 = vld [vmem:[%s739_s1 + $0x8] sm:$0xff] (!%p158_p3)  ;;  %v252_v41 = vld [vmem:[%s739_s1 + $0x20] sm:$0xff] (!%p158_p3) }
   0xb   : > { %v253_v42 = vld [vmem:[%s739_s1 + $0x28] sm:$0xff] (!%p158_p3) }
   0xe   : > { %s747_s12 = smov (!%p188_p4, %s617_s12), 1 }
   0xf   : > { %s527_s16 = sshll.u32 %s747_s12, 4 }
  0x10   : > { %s196_s19 = scalar_lea.vmem %s738_s0, %s527_s16 }
  0x11   : > { %v205_v0 = vld [vmem:[%s196_s19] sm:$0xff]  ;;  %v206_v1 = vld [vmem:[%s196_s19 + $0x8] sm:$0xf] }
  0x12   : > { %v210_v2 = vrot.slane %v205_v0, 1  ;;  %v211_v3 = vrot.slane %v206_v1, 1  ;;  %v220_v4 = vrot.slane %v205_v0, 2  ;;  %v221_v5 = vrot.slane %v206_v1, 2 }
  0x13   : > { %v230_v6 = vrot.slane %v205_v0, 3  ;;  %v231_v7 = vrot.slane %v206_v1, 3 }
  0x14   : > { %v212_v8 = vsel %vm209_vm0, %v210_v2, %v211_v3  ;;  %v222_v9 = vsel %vm219_vm1, %v220_v4, %v221_v5 }
  0x15   : > { %v586_v10 = vpack.i.bf16 %v211_v3, %v212_v8  ;;  %v232_v11 = vsel %vm229_vm2, %v230_v6, %v231_v7  ;;  %v591_v15 = vpack.i.bf16 %v221_v5, %v222_v9 }
  0x16   : > { %v596_v14 = vpack.i.bf16 %v231_v7, %v232_v11 }
  0x17   : > { %587 = vrot.lane.b32.xlu0 %v586_v10, %s627_s24  ;;  %s557_s24 = smul.u32 48, %s747_s12 }
  0x18   : > { %597 = vrot.lane.b32.xlu1 %v596_v14, %s628_s25 }
  0x19   : > { %s204_s27 = scalar_lea.vmem %s741_s3, %s557_s24 }
  0x1b   : > { %592 = vrot.lane.b32.xlu0 %v591_v15, %s629_s26 }
  0x1c   : > { %262 = vperm.xlu1 %601, %v254_v16  }
  0x1f   : > { %267 = vperm.xlu0 %602, %v255_v18  }
  0x20   : > { %272 = vperm.xlu1 %601, %v256_v19  }
  0x23   : > { %282 = vperm.xlu0 %602, %v258_v20  }
  0x24   : > { %277 = vperm.xlu1 %601, %v257_v21  }
  0x28   : > { %287 = vperm.xlu1 %601, %v259_v22  }
  0x89   : > { %v588_v23 = vpop.permute.xlu0 %587 }
  0x8a   : > { %v598_v24 = vpop.permute.xlu1 %597  ;;  %v590_v25 = vunpack.i.h.bf16 %v588_v23  ;;  %v589_v26 = vunpack.i.l.bf16 %v588_v23 }
  0x8b   : > { %v600_v28 = vunpack.i.h.bf16 %v598_v24  ;;  %v599_v29 = vunpack.i.l.bf16 %v598_v24 }
  0x8c   : > { %v241_v32 = vsel %vm239_vm4, %v206_v1, %v590_v25  ;;  %v240_v33 = vsel %vm239_vm4, %v205_v0, %v589_v26 }
  0x8d   : > { %v593_v27 = vpop.permute.xlu0 %592 }
  0x8e   : > { %v595_v30 = vunpack.i.h.bf16 %v593_v27  ;;  %v594_v31 = vunpack.i.l.bf16 %v593_v27 }
  0x90   : > { %v243_v34 = vsel %vm242_vm5, %v240_v33, %v594_v31  ;;  %v244_v35 = vsel %vm242_vm5, %v241_v32, %v595_v30 }
  0x91   : > { %v246_v36 = vsel %vm245_vm6, %v243_v34, %v599_v29  ;;  %v247_v37 = vsel %vm245_vm6, %v244_v35, %v600_v28 }
  0x92   : > { %v549_v38 = vpack.c.bf16 %v247_v37, %v246_v36 }
  0x94   : > { %551 = vmatprep.subr.msk.bf16.mxu0 %vm550_vm7, %v549_v38  ;;  %555 = vmatprep.subr.msk.bf16.mxu1 %vm550_vm7, %v549_v38 }
  0x95   : > { %554 = vmatpush3.bf16.xpose.msk.msra.mxu0 %vm550_vm7, %v549_v38  ;;  %556 = vmatpush3.bf16.xpose.msk.msra.mxu1 %vm550_vm7, %v549_v38 }
  0x9b   : > { %v263_v43 = vpop.permute.xlu1 %262 }
  0x9c   : > { %541 = vmatmul.mubr.msk.f32.vlgmr.msra.gmra.mrb[0].mxu0 %vm290_vm3, %v249_v39  ;;  %544 = vmatmul.mubr.msk.f32.vlgmr.msra.gmra.mrb[0].mxu1 %vm290_vm3, %v251_v40 }
  0x9d   : > { %546 = vmatprep.mubr.msk.f32.mxu1 %vm290_vm3, %v252_v41 }
  0x9e   : > { %v268_v46 = vpop.permute.xlu0 %267 }
  0x9f   : > { %v273_v44 = vpop.permute.xlu1 %272 }
  0xa0   : > { %547 = vmatmul.mubr.msk.f32.gmra.mrb[2].mxu1 %vm290_vm3, %v253_v42 }
  0xa2   : > { %v283_v61 = vpop.permute.xlu0 %282 }
  0xa3   : > { %v278_v45 = vpop.permute.xlu1 %277 }
  0xa7   : > { %v288_v57 = vpop.permute.xlu1 %287 }
 0x16f   : > { %v542_v47 = vpop.f32.mrb[0].mxu0  ;;  %v545_v48 = vpop.f32.mrb[0].mxu1 }
 0x170   : > { %v387_v49 = vadd.f32 %v542_v47, %v268_v46  ;;  %v397_v50 = vadd.f32 %v545_v48, %v278_v45  ;;  %v381_v51 = vpop.f32.mrb[1].mxu0  ;;  %v391_v52 = vpop.f32.mrb[1].mxu1 }
 0x171   : > { %v382_v53 = vadd.f32 %v381_v51, %v263_v43  ;;  %v392_v54 = vadd.f32 %v391_v52, %v273_v44 }
 0x172   : > { %v411_v55 = vmax.f32 %v387_v49, 0.0  ;;  %v413_v56 = vmax.f32 %v397_v50, 0.0 }
 0x173   : > { %v410_v58 = vmax.f32 %v382_v53, 0.0  ;;  %v412_v59 = vmax.f32 %v392_v54, 0.0  ;;  %v548_v60 = vpop.f32.mrb[2].mxu1 }
 0x174   : > { %418 = vst.msk [vmem:[%s204_s27 + $0x8] sm:$0xff] %vm416_vm8, %v411_v55  ;;  %420 = vst.msk [vmem:[%s204_s27 + $0x18] sm:$0xff] %vm416_vm8, %v413_v56  ;;  %v407_v62 = vadd.f32 %v548_v60, %v288_v57  ;;  %v401_v63 = vpop.f32.mrb[3].mxu1 }
 0x175   : > { %417 = vst.msk [vmem:[%s204_s27] sm:$0xff] %vm416_vm8, %v410_v58  ;;  %419 = vst.msk [vmem:[%s204_s27 + $0x10] sm:$0xff] %vm416_vm8, %v412_v59  ;;  %v402_v0 = vadd.f32 %v401_v63, %v283_v61 }
 0x176   : > { %v415_v1 = vmax.f32 %v407_v62, 0.0 }
 0x177   : > { %v414_v2 = vmax.f32 %v402_v0, 0.0 }
 0x178   : > { %422 = vst.msk [vmem:[%s204_s27 + $0x28] sm:$0xff] %vm416_vm8, %v415_v1 }
 0x179   : > { %421 = vst.msk [vmem:[%s204_s27 + $0x20] sm:$0xff] %vm416_vm8, %v414_v2 }
 0x17a PF: > { %s13_s14 = sadd.s32 1, %s625_s14   ;;  %s742_s12 = smov %s621_s13 }
 0x17b   : > { %p10_p5 = scmp.ge.s32.totalorder %s13_s14, 4   ;;  %s743_s13 = smov %s745_s15 }
 0x17d   :  { %12 = sbr.rel (!%p10_p5) target bundleno = 2 (0x2), region = 62 }

</bundles_post_ra>
